<compile_context>
chip_gen: v6e
topology: v6e:2x2x1
jax: 0.10.0
libtpu: 0.0.40
codegen_flags: <defaults>
</compile_context>

<pallas_src>
import jax
import jax.numpy as jnp
from jax.experimental import pallas as pl
from jax.experimental.pallas import tpu as pltpu


def _round_up(v, m):
    return (v + m - 1) // m * m


# Static lane offsets of each bias segment inside the packed bias buffer.
_B_OFF = (0, 512, 640, 768, 896)
_B_TOTAL = 1024


def _dqn_kernel(x_ref, w1_ref, w2_ref, w345_ref, b_ref, o_ref):
    """Fused 5-layer MLP.

    x is f32 and cast to bf16 in-kernel; all weights stream as bf16; every dot
    accumulates in f32 on the MXU; bias-add + ReLU + bf16 re-cast are fused.
    Tail layers are zero-padded to 128 lanes so every intermediate and the
    output block are lane-dense.
    """
    x = x_ref[...].astype(jnp.bfloat16)

    # Layer 1: (TB, F) @ (F, 512)
    h = jnp.dot(x, w1_ref[...], preferred_element_type=jnp.float32)
    h = jnp.maximum(h + b_ref[:, _B_OFF[0]:_B_OFF[0] + 512], 0.0).astype(jnp.bfloat16)

    # Layer 2: (TB, 512) @ (512, 128)
    h = jnp.dot(h, w2_ref[...], preferred_element_type=jnp.float32)
    h = jnp.maximum(h + b_ref[:, _B_OFF[1]:_B_OFF[1] + 128], 0.0).astype(jnp.bfloat16)

    # Layer 3 (padded 64 -> 128 lanes): (TB, 128) @ (128, 128)
    h = jnp.dot(h, w345_ref[:, 0:128], preferred_element_type=jnp.float32)
    h = jnp.maximum(h + b_ref[:, _B_OFF[2]:_B_OFF[2] + 128], 0.0).astype(jnp.bfloat16)

    # Layer 4 (padded 16 -> 128 lanes): (TB, 128) @ (128, 128)
    h = jnp.dot(h, w345_ref[:, 128:256], preferred_element_type=jnp.float32)
    h = jnp.maximum(h + b_ref[:, _B_OFF[3]:_B_OFF[3] + 128], 0.0).astype(jnp.bfloat16)

    # Layer 5 (padded n_actions -> 128 lanes, no ReLU): (TB, 128) @ (128, 128)
    out = jnp.dot(h, w345_ref[:, 256:384], preferred_element_type=jnp.float32)
    o_ref[...] = out + b_ref[:, _B_OFF[4]:_B_OFF[4] + 128]


def prepare_params(params):
    """One-time parameter prep (call outside the hot loop).

    params: list of (W, b) with W shaped (in, out), b shaped (1, out) or (out,).
    Returns pre-cast/pre-packed buffers consumed by dqn_forward.
    """
    (w1, b1), (w2, b2), (w3, b3), (w4, b4), (w5, b5) = params
    n_actions = w5.shape[1]
    assert n_actions <= 128, "n_actions > 128 not supported by padded tail"

    w1 = w1.astype(jnp.bfloat16)                       # (F, 512)
    w2 = w2.astype(jnp.bfloat16)                       # (512, 128)

    def pad_to(w, rows, cols):
        buf = jnp.zeros((rows, cols), jnp.float32)
        return buf.at[:w.shape[0], :w.shape[1]].set(w.astype(jnp.float32))

    # Zero-pad tail layers to 128 lanes and pack them into one bf16 buffer.
    w3p = pad_to(w3, 128, 128)                         # (128, 64)        -> (128,128)
    w4p = pad_to(w4, 128, 128)                         # (64, 16)         -> (128,128)
    w5p = pad_to(w5, 128, 128)                         # (16, n_actions)  -> (128,128)
    w345 = jnp.concatenate([w3p, w4p, w5p], axis=1).astype(jnp.bfloat16)  # (128, 384)

    # All biases in one fp32 buffer at 128-aligned static offsets; padding = 0.
    b_packed = jnp.zeros((1, _B_TOTAL), jnp.float32)
    for b, off in zip((b1, b2, b3, b4, b5), _B_OFF):
        b = jnp.asarray(b, jnp.float32).reshape(1, -1)
        b_packed = b_packed.at[:, off:off + b.shape[1]].set(b)

    return {"w1": w1, "w2": w2, "w345": w345, "b": b_packed,
            "n_actions": n_actions}


def dqn_forward(x, packed, *, tile_b=512):
    """x: (B, F) float32. packed: output of prepare_params. Returns (B, n_actions) f32."""
    B, F = x.shape
    w1, w2, w345, b = packed["w1"], packed["w2"], packed["w345"], packed["b"]
    n_actions = packed["n_actions"]
    assert w1.shape[0] == F

    # Large batch tiles to amortize per-step pipeline overhead, but keep at
    # least two grid steps so v7x can shard the batch across both TensorCores.
    # TB is a multiple of 16 (bf16 sublane pack, f32 sublane tile).
    TB = min(tile_b, max(16, _round_up(pl.cdiv(B, 2), 16)))
    grid = (pl.cdiv(B, TB),)

    const = lambda i: (0, 0)  # weights / biases stay resident across grid steps

    dims = [(F, 512), (512, 128), (128, 128), (128, 128), (128, 128)]
    flops = 2 * B * sum(a * c for a, c in dims)
    bytes_accessed = (x.size * 4 + w1.size * 2 + w2.size * 2 + w345.size * 2
                      + b.size * 4 + B * 128 * 4)

    out = pl.pallas_call(
        _dqn_kernel,
        out_shape=jax.ShapeDtypeStruct((B, 128), jnp.float32),
        grid=grid,
        in_specs=[
            pl.BlockSpec((TB, F), lambda i: (i, 0)),   # f32 x, cast in-kernel
            pl.BlockSpec(w1.shape, const),
            pl.BlockSpec(w2.shape, const),
            pl.BlockSpec(w345.shape, const),
            pl.BlockSpec(b.shape, const),
        ],
        out_specs=pl.BlockSpec((TB, 128), lambda i: (i, 0)),  # lane-dense output
        compiler_params=pltpu.CompilerParams(
            dimension_semantics=("parallel",)),
        cost_estimate=pl.CostEstimate(flops=flops, transcendentals=0,
                                      bytes_accessed=bytes_accessed),
    )(x, w1, w2, w345, b)

    return out[:, :n_actions]


def init_params(key, input_shape, n_actions):
    """Deterministic init mirroring the PyTorch layer sizes.

    Weights returned pre-transposed to (in, out); biases as (1, out), fp32."""
    sizes = [input_shape, 512, 128, 64, 16, n_actions]
    params = []
    for i in range(len(sizes) - 1):
        fan_in, fan_out = sizes[i], sizes[i + 1]
        key, kw, kb = jax.random.split(key, 3)
        bound = 1.0 / jnp.sqrt(fan_in)
        w = jax.random.uniform(kw, (fan_in, fan_out), jnp.float32, -bound, bound)
        b = jax.random.uniform(kb, (1, fan_out), jnp.float32, -bound, bound)
        params.append((w, b))
    return params


def dqn_reference(x, params):
    """Mirrors the kernel's numerics: bf16 weights/activations, fp32 accumulate."""
    h = x.astype(jnp.bfloat16).astype(jnp.float32)
    for i, (w, b) in enumerate(params):
        wq = w.astype(jnp.bfloat16).astype(jnp.float32)
        h = h @ wq + b.astype(jnp.float32)
        if i < len(params) - 1:
            h = jnp.maximum(h, 0.0)
            h = h.astype(jnp.bfloat16).astype(jnp.float32)
    return h


if __name__ == "__main__":
    key = jax.random.PRNGKey(0)
    B, input_shape, n_actions = 32, 128, 4

    k_x, k_p = jax.random.split(key)
    x = jax.random.normal(k_x, (B, input_shape), jnp.float32)
    params = init_params(k_p, input_shape, n_actions)
    packed = prepare_params(params)   # one-time prep, outside the hot path

    # TB resolves to 16 -> grid of 2 batch tiles: exercises resident-weight
    # pipelining and the two-TensorCore batch split on v7x.
    out = jax.block_until_ready(dqn_forward(x, packed))
    ref = dqn_reference(x, params)

    assert out.shape == (B, n_actions)
    assert jnp.allclose(out, ref, atol=2e-3, rtol=2e-3)
    print("KERNEL_OK")
</pallas_src>

<mosaic_0001>
module attributes {stable_mosaic.version = 11 : i64} {
  func.func @_dqn_kernel(%arg0: i32, %arg1: memref<16x128xf32, #tpu.memory_space<vmem>>, %arg2: memref<128x512xbf16, #tpu.memory_space<vmem>>, %arg3: memref<512x128xbf16, #tpu.memory_space<vmem>>, %arg4: memref<128x384xbf16, #tpu.memory_space<vmem>>, %arg5: memref<1x1024xf32, #tpu.memory_space<vmem>>, %arg6: memref<16x128xf32, #tpu.memory_space<vmem>>) attributes {dimension_semantics = [#tpu.dimension_semantics<parallel>], iteration_bounds = array<i64: 2>, scalar_prefetch = 0 : i64, scratch_operands = 0 : i64, tpu.core_type = #tpu.core_type<tc>, window_params = [{transform_indices = @transform_0, window_bounds = array<i64: 16, 128>}, {pipeline_mode = #tpu.pipeline_mode<synchronous>, transform_indices = @transform_1, window_bounds = array<i64: 128, 512>}, {pipeline_mode = #tpu.pipeline_mode<synchronous>, transform_indices = @transform_2, window_bounds = array<i64: 512, 128>}, {pipeline_mode = #tpu.pipeline_mode<synchronous>, transform_indices = @transform_3, window_bounds = array<i64: 128, 384>}, {pipeline_mode = #tpu.pipeline_mode<synchronous>, transform_indices = @transform_4, window_bounds = array<i64: 1, 1024>}, {transform_indices = @transform_5, window_bounds = array<i64: 16, 128>}]} {
    %c0 = arith.constant 0 : index
    %c0_0 = arith.constant 0 : index
    %0 = vector.load %arg1[%c0, %c0_0] : memref<16x128xf32, #tpu.memory_space<vmem>>, vector<16x128xf32>
    %1 = arith.truncf %0 : vector<16x128xf32> to vector<16x128xbf16>
    %c0_1 = arith.constant 0 : index
    %c0_2 = arith.constant 0 : index
    %2 = vector.load %arg2[%c0_1, %c0_2] : memref<128x512xbf16, #tpu.memory_space<vmem>>, vector<128x512xbf16>
    %cst = arith.constant dense<0.000000e+00> : vector<16x512xf32>
    %3 = tpu.matmul %1, %2, %cst {dimension_numbers = #tpu.dot_dimension_numbers<[1], [0], [0], [1], [0, 0, 1, 1], [], []>} : vector<16x128xbf16>, vector<128x512xbf16>, vector<16x512xf32> -> vector<16x512xf32>
    %c0_3 = arith.constant 0 : index
    %c0_4 = arith.constant 0 : index
    %4 = vector.load %arg5[%c0_3, %c0_4] : memref<1x1024xf32, #tpu.memory_space<vmem>>, vector<1x512xf32>
    %5 = vector.broadcast %4 : vector<1x512xf32> to vector<16x512xf32>
    %6 = arith.addf %3, %5 : vector<16x512xf32>
    %cst_5 = arith.constant 0.000000e+00 : f32
    %7 = vector.broadcast %cst_5 : f32 to vector<16x512xf32>
    %8 = arith.maximumf %6, %7 : vector<16x512xf32>
    %9 = arith.truncf %8 : vector<16x512xf32> to vector<16x512xbf16>
    %c0_6 = arith.constant 0 : index
    %c0_7 = arith.constant 0 : index
    %10 = vector.load %arg3[%c0_6, %c0_7] : memref<512x128xbf16, #tpu.memory_space<vmem>>, vector<512x128xbf16>
    %cst_8 = arith.constant dense<0.000000e+00> : vector<16x128xf32>
    %11 = tpu.matmul %9, %10, %cst_8 {dimension_numbers = #tpu.dot_dimension_numbers<[1], [0], [0], [1], [0, 0, 1, 1], [], []>} : vector<16x512xbf16>, vector<512x128xbf16>, vector<16x128xf32> -> vector<16x128xf32>
    %c0_9 = arith.constant 0 : index
    %c512 = arith.constant 512 : index
    %12 = vector.load %arg5[%c0_9, %c512] : memref<1x1024xf32, #tpu.memory_space<vmem>>, vector<1x128xf32>
    %13 = vector.broadcast %12 : vector<1x128xf32> to vector<16x128xf32>
    %14 = arith.addf %11, %13 : vector<16x128xf32>
    %cst_10 = arith.constant 0.000000e+00 : f32
    %15 = vector.broadcast %cst_10 : f32 to vector<16x128xf32>
    %16 = arith.maximumf %14, %15 : vector<16x128xf32>
    %17 = arith.truncf %16 : vector<16x128xf32> to vector<16x128xbf16>
    %c0_11 = arith.constant 0 : index
    %c0_12 = arith.constant 0 : index
    %18 = vector.load %arg4[%c0_11, %c0_12] : memref<128x384xbf16, #tpu.memory_space<vmem>>, vector<128x128xbf16>
    %cst_13 = arith.constant dense<0.000000e+00> : vector<16x128xf32>
    %19 = tpu.matmul %17, %18, %cst_13 {dimension_numbers = #tpu.dot_dimension_numbers<[1], [0], [0], [1], [0, 0, 1, 1], [], []>} : vector<16x128xbf16>, vector<128x128xbf16>, vector<16x128xf32> -> vector<16x128xf32>
    %c0_14 = arith.constant 0 : index
    %c640 = arith.constant 640 : index
    %20 = vector.load %arg5[%c0_14, %c640] : memref<1x1024xf32, #tpu.memory_space<vmem>>, vector<1x128xf32>
    %21 = vector.broadcast %20 : vector<1x128xf32> to vector<16x128xf32>
    %22 = arith.addf %19, %21 : vector<16x128xf32>
    %cst_15 = arith.constant 0.000000e+00 : f32
    %23 = vector.broadcast %cst_15 : f32 to vector<16x128xf32>
    %24 = arith.maximumf %22, %23 : vector<16x128xf32>
    %25 = arith.truncf %24 : vector<16x128xf32> to vector<16x128xbf16>
    %c0_16 = arith.constant 0 : index
    %c128 = arith.constant 128 : index
    %26 = vector.load %arg4[%c0_16, %c128] : memref<128x384xbf16, #tpu.memory_space<vmem>>, vector<128x128xbf16>
    %cst_17 = arith.constant dense<0.000000e+00> : vector<16x128xf32>
    %27 = tpu.matmul %25, %26, %cst_17 {dimension_numbers = #tpu.dot_dimension_numbers<[1], [0], [0], [1], [0, 0, 1, 1], [], []>} : vector<16x128xbf16>, vector<128x128xbf16>, vector<16x128xf32> -> vector<16x128xf32>
    %c0_18 = arith.constant 0 : index
    %c768 = arith.constant 768 : index
    %28 = vector.load %arg5[%c0_18, %c768] : memref<1x1024xf32, #tpu.memory_space<vmem>>, vector<1x128xf32>
    %29 = vector.broadcast %28 : vector<1x128xf32> to vector<16x128xf32>
    %30 = arith.addf %27, %29 : vector<16x128xf32>
    %cst_19 = arith.constant 0.000000e+00 : f32
    %31 = vector.broadcast %cst_19 : f32 to vector<16x128xf32>
    %32 = arith.maximumf %30, %31 : vector<16x128xf32>
    %33 = arith.truncf %32 : vector<16x128xf32> to vector<16x128xbf16>
    %c0_20 = arith.constant 0 : index
    %c256 = arith.constant 256 : index
    %34 = vector.load %arg4[%c0_20, %c256] : memref<128x384xbf16, #tpu.memory_space<vmem>>, vector<128x128xbf16>
    %cst_21 = arith.constant dense<0.000000e+00> : vector<16x128xf32>
    %35 = tpu.matmul %33, %34, %cst_21 {dimension_numbers = #tpu.dot_dimension_numbers<[1], [0], [0], [1], [0, 0, 1, 1], [], []>} : vector<16x128xbf16>, vector<128x128xbf16>, vector<16x128xf32> -> vector<16x128xf32>
    %c0_22 = arith.constant 0 : index
    %c896 = arith.constant 896 : index
    %36 = vector.load %arg5[%c0_22, %c896] : memref<1x1024xf32, #tpu.memory_space<vmem>>, vector<1x128xf32>
    %37 = vector.broadcast %36 : vector<1x128xf32> to vector<16x128xf32>
    %38 = arith.addf %35, %37 : vector<16x128xf32>
    %c0_23 = arith.constant 0 : index
    %c0_24 = arith.constant 0 : index
    %39 = vector.load %arg6[%c0_23, %c0_24] : memref<16x128xf32, #tpu.memory_space<vmem>>, vector<16x128xf32>
    tpu.vector_store %arg6[%c0_23, %c0_24], %38 {strides = array<i32>} : memref<16x128xf32, #tpu.memory_space<vmem>>, vector<16x128xf32>,
    return
  }
  func.func @transform_0(%arg0: i32) -> (i32, i32) {
    %c0_i32 = arith.constant 0 : i32
    %c0_i32_0 = arith.constant 0 : i32
    return %arg0, %c0_i32 : i32, i32
  }
  func.func @transform_1(%arg0: i32) -> (i32, i32) {
    %c0_i32 = arith.constant 0 : i32
    %c0_i32_0 = arith.constant 0 : i32
    %c0_i32_1 = arith.constant 0 : i32
    return %c0_i32, %c0_i32_0 : i32, i32
  }
  func.func @transform_2(%arg0: i32) -> (i32, i32) {
    %c0_i32 = arith.constant 0 : i32
    %c0_i32_0 = arith.constant 0 : i32
    %c0_i32_1 = arith.constant 0 : i32
    return %c0_i32, %c0_i32_0 : i32, i32
  }
  func.func @transform_3(%arg0: i32) -> (i32, i32) {
    %c0_i32 = arith.constant 0 : i32
    %c0_i32_0 = arith.constant 0 : i32
    %c0_i32_1 = arith.constant 0 : i32
    return %c0_i32, %c0_i32_0 : i32, i32
  }
  func.func @transform_4(%arg0: i32) -> (i32, i32) {
    %c0_i32 = arith.constant 0 : i32
    %c0_i32_0 = arith.constant 0 : i32
    %c0_i32_1 = arith.constant 0 : i32
    return %c0_i32, %c0_i32_0 : i32, i32
  }
  func.func @transform_5(%arg0: i32) -> (i32, i32) {
    %c0_i32 = arith.constant 0 : i32
    %c0_i32_0 = arith.constant 0 : i32
    return %arg0, %c0_i32 : i32, i32
  }
}

</mosaic_0001>

<bundles_post_ra>
// kernel: tpu_custom_call.1
= control target key start
LH: loop header
LB: loop body
LE: loop exit
PB: predicated region body
PF: predicated region fallthrough
CT: control target
= control target key end

     0   :  { %10 = vsyncpa [#allocation3], 0  ;;  %s2386_s0 = inlined_call_operand.hbm [shape: f32[32,128], index: 0, kind: input, shape index: {}]   ;;  %s2387_s1 = inlined_call_operand.hbm [shape: bf16[128,512], index: 1, kind: input, shape index: {}]   ;;  %s2388_s2 = inlined_call_operand.hbm [shape: bf16[512,128], index: 2, kind: input, shape index: {}]   ;;  %s2389_s3 = inlined_call_operand.hbm [shape: bf16[128,384], index: 3, kind: input, shape index: {}]   ;;  %s2390_s4 = inlined_call_operand.hbm [shape: f32[1,1024], index: 4, kind: input, shape index: {}]   ;;  %s2391_s5 = inlined_call_operand.hbm [shape: f32[32,128], index: 5, kind: output, shape index: {}]  }
   0x1   :  { %12 = vsyncpa [#allocation3 + $0x1], 0 }
   0x2   :  { %13 = vsyncpa [#allocation6], 0 }
   0x3   :  { %14 = vsyncpa [#allocation9], 0 }
   0x4   :  { %15 = vsyncpa [#allocation4], 0 }
   0x5   :  { %17 = vsyncpa [#allocation4 + $0x1], 0  ;;  %s2140_s18 = smov 0   ;;  %s2142_s19 = smov 0  }
   0x6   :  { %s2144_s20 = smov 0   ;;  %s2146_s21 = smov 0  }
   0x7 LB: > { %s2161_s22 = sadd.s32 4294967295, %s2089_s21   ;;  %s1434_s23 = sadd.s32 4294967294, %s2089_s21   ;;  %s2089_s21 = sphi %s2146_s21, %s2415_s21   ;;  %s2085_s20 = sphi %s2144_s20, %s2414_s20   ;;  %s2081_s19 = sphi %s2142_s19, %s2413_s19   ;;  %s2077_s18 = sphi %s2140_s18, %s2412_s18  }
   0x8   : > { %p43_p0 = scmp.ne.s32.totalorder %s2081_s19, %s2077_s18  ;;  %p2392_p1 = scmp.eq.s32.totalorder %s2161_s22, 0 }
   0x9   : > { %p157_p3 = scmp.eq.s32.totalorder %s1434_s23, 1  ;;  %p1435_p5 = scmp.ge.s32.totalorder %s2089_s21, 1 }
   0xa   : > { %p2170_p4 = por %p2392_p1, %p43_p0  ;;  %p164_p7 = scmp.lt.s32.totalorder %s2089_s21, 3 }
   0xb   : > { %p2175_p6 = por %p157_p3, %p43_p0  ;;  %s2091_s27 = smov [#allocation5]  }
   0xc   : > { %s2396_s24 = scalar_select %p2170_p4, 1, 0 }
   0xd   : > { %s2397_s25 = scalar_select %p2175_p6, 1, 0 }
   0xe   : > { %p2180_p8 = pnand %p1435_p5, %p164_p7  ;;  %s176_s28 = sshll.u32 %s2091_s27, 4  ;;  %s177_s28 = int_to_ptr.vmem [resolvable:$true] %s176_s28 }
   0xf   : > { %s2092_s30 = smov [#allocation8]   ;;  %s1896_s7 = scalar_lea.vmem %s177_s28, 4096 }
  0x10   : > { %s2398_s26 = scalar_select %p2180_p8, 1, 0 }
  0x11   : > { %p1701_p9 = pneg %p2180_p8  ;;  %s202_s6 = sshll.u32 %s2092_s30, 4  ;;  %s203_s6 = int_to_ptr.vmem [resolvable:$true] %s202_s6 }
  0x12   : > { %p1897_p13 = scmp.ne.s32.totalorder %s177_s28, %s1896_s7  ;;  %p1904_p5 = scmp.lt.s32.totalorder %s177_s28, %s177_s28 }
  0x13   : > { %p2189_p11 = pnand %p1701_p9, %p2392_p1  ;;  %p1905_p7 = scmp.lt.s32.totalorder %s1896_s7, %s1896_s7 }
  0x15   : > { %p1887_p12 = pneg %p2189_p11  ;;  %p1906_p10 = por %p1905_p7, %p1904_p5 }
  0x17   : > { %p1899_p0 = pnand %p1897_p13, %p1887_p12 }
  0x19   : > { %p1900_p3 = pneg %p1899_p0 }
  0x1b   : > { %p1907_p9 = pnand %p1906_p10, %p1900_p3 }
  0x1d   : > { %1910 = shalt.err (!%p1907_p9)
}
  0x1e   : > { %s2093_s8 = smov 256   ;;  %s2094_s9 = smov 16  }
  0x1f   : > { %1704 = dma.hbm_to_vmem [thread:$0]  (!%p2189_p11), %s2387_s1, 4096, %s177_s28, [#allocation6], %s2093_s8, %s2093_s8, %s2094_s9  }
  0x20   : > { %s1922_s12 = scalar_lea.vmem %s203_s6, 3072  ;;  %p1930_p2 = scmp.lt.s32.totalorder %s203_s6, %s203_s6 }
  0x21   : > { %p1923_p1 = scmp.ne.s32.totalorder %s203_s6, %s1922_s12  ;;  %p1931_p6 = scmp.lt.s32.totalorder %s1922_s12, %s1922_s12 }
  0x23   : > { %p1925_p13 = pnand %p1923_p1, %p1887_p12  ;;  %p1932_p5 = por %p1931_p6, %p1930_p2 }
  0x25   : > { %p1926_p0 = pneg %p1925_p13 }
  0x27   : > { %p1933_p10 = pnand %p1932_p5, %p1926_p0 }
  0x29   : > { %1936 = shalt.err (!%p1933_p10)
}
  0x2a   : > { %s2095_s13 = smov 192   ;;  %s2096_s14 = smov 12  }
  0x2b   : > { %1710 = dma.hbm_to_vmem [thread:$0]  (!%p2189_p11), %s2389_s3, 3072, %s203_s6, [#allocation9], %s2095_s13, %s2095_s13, %s2096_s14  }
  0x2c   : > { %s2097_s17 = smov [#allocation7]  }
  0x2d   : > { %s189_s23 = sshll.u32 %s2097_s17, 4  ;;  %s190_s23 = int_to_ptr.vmem [resolvable:$true] %s189_s23 }
  0x2e   : > { %s1948_s27 = scalar_lea.vmem %s190_s23, 4096  ;;  %p1956_p6 = scmp.lt.s32.totalorder %s190_s23, %s190_s23 }
  0x2f   : > { %p1949_p1 = scmp.ne.s32.totalorder %s190_s23, %s1948_s27  ;;  %p1957_p7 = scmp.lt.s32.totalorder %s1948_s27, %s1948_s27 }
  0x31   : > { %p1951_p3 = pnand %p1949_p1, %p1887_p12  ;;  %p1958_p9 = por %p1957_p7, %p1956_p6 }
  0x33   : > { %p1952_p2 = pneg %p1951_p3 }
  0x35   : > { %p1959_p13 = pnand %p1958_p9, %p1952_p2 }
  0x37   : > { %1962 = shalt.err (!%p1959_p13)
}
  0x38   : > { %s2098_s28 = smov 64   ;;  %s2099_s30 = smov 4  }
  0x39   : > { %1707 = dma.hbm_to_vmem [thread:$0]  (!%p2189_p11), %s2388_s2, 4096, %s190_s23, [#allocation6], %s2098_s28, %s2098_s28, %s2099_s30  }
  0x3a   : > { %s2100_s8 = smov [#allocation10]  }
  0x3b   : > { %s216_s9 = sshll.u32 %s2100_s8, 4  ;;  %s217_s9 = int_to_ptr.vmem [resolvable:$true] %s216_s9 }
  0x3c   : > { %s1974_s10 = scalar_lea.vmem %s217_s9, 128  ;;  %p1982_p1 = scmp.lt.s32.totalorder %s217_s9, %s217_s9 }
  0x3d   : > { %p1975_p0 = scmp.ne.s32.totalorder %s217_s9, %s1974_s10  ;;  %p1983_p3 = scmp.lt.s32.totalorder %s1974_s10, %s1974_s10 }
  0x3f   : > { %p1977_p5 = pnand %p1975_p0, %p1887_p12  ;;  %p1984_p2 = por %p1983_p3, %p1982_p1 }
  0x41   : > { %p1978_p10 = pneg %p1977_p5 }
  0x43   : > { %p1985_p6 = pnand %p1984_p2, %p1978_p10 }
  0x45   : > { %1988 = shalt.err (!%p1985_p6)
}
  0x46   : > { %1713 = dma.hbm_to_vmem [thread:$0]  (!%p2189_p11), %s2390_s4, 128, %s217_s9, [#allocation9]  }
  0x47   : > { %s2228_s13 = sadd.s32 1, %s2089_s21   ;;  %s30_s14 = sadd.s32 1, %s2085_s20 }
  0x48   : > { %s27_s29 = ssub.s32 %s2089_s21, %s2228_s13  ;;  %p37_p12 = scmp.ne.s32.totalorder %s2085_s20, %s2081_s19 }
  0x49   : > { %p28_p7 = scmp.eq.s32.totalorder %s27_s29, 0  ;;  %p38_p9 = scmp.eq.s32.totalorder %s2089_s21, 0 }
  0x4a   : > { %p2400_p13 = scmp.eq.s32.totalorder %s2161_s22, 1  ;;  %p1726_p5 = scmp.lt.s32.totalorder %s2089_s21, 2 }
  0x4b   : > { %s2244_s16 = scalar_select %p28_p7, %s2085_s20, %s30_s14  }
  0x4c   : > { %p2238_p0 = por %p2400_p13, %p37_p12  ;;  %p39_p10 = por %p38_p9, %p37_p12 }
  0x4d   : > { %s227_s17 = sand.u32 1, %s2085_s20   ;;  %s1548_s27 = sshll.u32 %s2089_s21, 8 }
  0x4e   : > { %s2401_s15 = scalar_select %p2238_p0, 1, 0 }
  0x4f   : > { %s1441_s23 = sshll.u32 %s227_s17, 4  ;;  %s2251_s6 = scalar_lea.hbm %s2386_s0, %s1548_s27 }
  0x50   : > { %s231_s7 = scalar_lea.vmem [#allocation2], %s1441_s23  ;;  %p2255_p11 = pnand %p1726_p5, %p39_p10 }
  0x51   : > { %s238_s8 = sshll.u32 %s231_s7, 4  ;;  %s2259_s10 = scalar_lea.sflag [#allocation3], %s227_s17  ;;  %s2253_s8 = int_to_ptr.vmem [resolvable:$true] %s238_s8 }
  0x52   : > { %s1989_s11 = scalar_lea.hbm %s2251_s6, 256  ;;  %p1991_p3 = pneg %p2255_p11 }
  0x53   : > { %p1990_p1 = scmp.ne.s32.totalorder %s2251_s6, %s1989_s11  ;;  %s1994_s29 = scalar_lea.hbm %s2386_s0, 512 }
  0x54   : > { %p1995_p12 = scmp.lt.s32.totalorder %s2251_s6, %s2386_s0  ;;  %p1996_p7 = scmp.lt.s32.totalorder %s1994_s29, %s1989_s11 }
  0x55   : > { %p1992_p2 = pnand %p1991_p3, %p1990_p1 }
  0x56   : > { %p1997_p9 = por %p1996_p7, %p1995_p12 }
  0x57   : > { %p1993_p6 = pneg %p1992_p2 }
  0x59   : > { %p1998_p13 = pnand %p1997_p9, %p1993_p6 }
  0x5b   : > { %2001 = shalt.err (!%p1998_p13)
}
  0x5c   : > { %s2002_s17 = scalar_lea.vmem %s2253_s8, 256  ;;  %s2101_s28 = smov [#allocation2]  }
  0x5d   : > { %p2003_p5 = scmp.ne.s32.totalorder %s2253_s8, %s2002_s17  ;;  %s2007_s30 = sshll.u32 %s2101_s28, 4  ;;  %s2008_s30 = int_to_ptr.vmem [resolvable:$false] %s2007_s30 }
  0x5e   : > { %s2009_s7 = scalar_lea.vmem %s2008_s30, 512  ;;  %p2010_p2 = scmp.lt.s32.totalorder %s2253_s8, %s2008_s30 }
  0x5f   : > { %p2005_p10 = pnand %p2003_p5, %p1991_p3  ;;  %p2011_p0 = scmp.lt.s32.totalorder %s2009_s7, %s2002_s17 }
  0x61   : > { %p2006_p1 = pneg %p2005_p10  ;;  %p2012_p4 = por %p2011_p0, %p2010_p2 }
  0x63   : > { %p2013_p8 = pnand %p2012_p4, %p2006_p1 }
  0x65   : > { %2016 = shalt.err (!%p2013_p8)
}
  0x66   : > { %s2102_s11 = smov 128   ;;  %s2103_s12 = smov 8  }
  0x67   : > { %1717 = dma.hbm_to_vmem [thread:$0]  (!%p2255_p11), %s2251_s6, 256, %s2253_s8, %s2259_s10, %s2102_s11, %s2102_s11, %s2103_s12  }
  0x68   : > { %p2403_p3 = scmp.ne.s32.totalorder %s2398_s26, 0 }
  0x69   : > { %s2283_s14 = sand.u32 (!%p2403_p3), 1, %s2081_s19   ;;  %p2404_p4 = scmp.ne.s32.totalorder (!%p2403_p3), %s2396_s24, 0 }
  0x6a   : > { %250 = sbr.rel (%p2403_p3) target bundleno = 1187 (0x4a3), region = 40  ;;  %s1445_s29 = sshll.u32 (!%p2403_p3), %s2283_s14, 4 }
  0x6b   : > { %s253_s23 = scalar_lea.sflag (!%p2403_p3), [#allocation3], %s2283_s14  ;;  %s2289_s27 = scalar_lea.vmem (!%p2403_p3), [#allocation2], %s1445_s29 }
  0x6f   : > { %2060 = dma.done.wait (%p2404_p4), %s253_s23, 256  }
  0x70   : > { %2062 = vsyncadd (%p2404_p4), %s253_s23, 4294967040  ;;  %p2405_p8 = scmp.eq.s32.totalorder %s2161_s22, 0 }
  0x72   : > { %2064 = dma.done.wait (%p2405_p8), [#allocation6], 8192   ;;  %p2406_p0 = pmov %p2405_p8 }
  0x74   : > { %2066 = vsyncadd (%p2406_p0), [#allocation6], 4294959104  ;;  %p2407_p11 = pmov %p2406_p0 }
  0x75   : > { %p2408_p6 = pmov %p2406_p0 }
  0x76   : > { %2068 = dma.done.wait (%p2407_p11), [#allocation9], 3200  }
  0x77   : > { %2070 = vsyncadd (%p2408_p6), [#allocation9], 4294964096  ;;  %v2104_v0 = vmov 0   ;;  %v1781_v1 = vld [vmem:[#allocation5 + $0xe4] ss:$16 sps:$4 sm:$0xff]   ;;  %v303_v34 = vld [vmem:[%s2289_s27 + $0x8] sm:$0xff] }
  0x78   : > { %551 = vmatprep.mubr.bf16.mxu0 %v2104_v0  ;;  %594 = vmatprep.mubr.bf16.mxu1 %v2104_v0  ;;  %v1783_v2 = vld [vmem:[#allocation5 + $0xec] ss:$16 sps:$4 sm:$0xff]   ;;  %v1785_v3 = vld [vmem:[#allocation5 + $0xe0] ss:$16 sps:$4 sm:$0xff]   ;;  %v1786_v4 = vld [vmem:[#allocation5 + $0xe8] ss:$16 sps:$4 sm:$0xff]  }
  0x79   : > { %519 = vmatprep.subr.bf16.mxu0 %v1781_v1  ;;  %562 = vmatprep.subr.bf16.mxu1 %v1783_v2  ;;  %v1787_v5 = vld [vmem:[#allocation5 + $0xc4] ss:$16 sps:$4 sm:$0xff]   ;;  %v1789_v6 = vld [vmem:[#allocation5 + $0xcc] ss:$16 sps:$4 sm:$0xff]   ;;  %v1791_v7 = vld [vmem:[#allocation5 + $0xc0] ss:$16 sps:$4 sm:$0xff]  }
  0x7a   : > { %520 = vmatpush1.bf16.msra.mxu0 %v1785_v3  ;;  %563 = vmatpush1.bf16.msra.mxu1 %v1786_v4  ;;  %v1792_v8 = vld [vmem:[#allocation5 + $0xc8] ss:$16 sps:$4 sm:$0xff]   ;;  %v1793_v9 = vld [vmem:[#allocation5 + $0xa4] ss:$16 sps:$4 sm:$0xff]   ;;  %v1795_v10 = vld [vmem:[#allocation5 + $0xac] ss:$16 sps:$4 sm:$0xff]  }
  0x7b   : > { %521 = vmatprep.subr.bf16.mxu0 %v1787_v5  ;;  %564 = vmatprep.subr.bf16.mxu1 %v1789_v6  ;;  %v1797_v11 = vld [vmem:[#allocation5 + $0xa0] ss:$16 sps:$4 sm:$0xff]   ;;  %v1798_v12 = vld [vmem:[#allocation5 + $0xa8] ss:$16 sps:$4 sm:$0xff]   ;;  %v1799_v13 = vld [vmem:[#allocation5 + $0x84] ss:$16 sps:$4 sm:$0xff]   ;;  %v339_v5 = vlaneseq }
  0x7c   : > { %v1801_v14 = vld [vmem:[#allocation5 + $0x8c] ss:$16 sps:$4 sm:$0xff]   ;;  %v1803_v15 = vld [vmem:[#allocation5 + $0x80] ss:$16 sps:$4 sm:$0xff]   ;;  %v1804_v16 = vld [vmem:[#allocation5 + $0x88] ss:$16 sps:$4 sm:$0xff]  }
  0x7d   : > { %v1805_v17 = vld [vmem:[#allocation5 + $0x64] ss:$16 sps:$4 sm:$0xff]   ;;  %v1807_v18 = vld [vmem:[#allocation5 + $0x6c] ss:$16 sps:$4 sm:$0xff]   ;;  %v1809_v19 = vld [vmem:[#allocation5 + $0x60] ss:$16 sps:$4 sm:$0xff]  }
  0x7e   : > { %522 = vmatpush1.bf16.msra.mxu0 %v1791_v7  ;;  %565 = vmatpush1.bf16.msra.mxu1 %v1792_v8  ;;  %v1810_v20 = vld [vmem:[#allocation5 + $0x68] ss:$16 sps:$4 sm:$0xff]   ;;  %v1811_v21 = vld [vmem:[#allocation5 + $0x44] ss:$16 sps:$4 sm:$0xff]   ;;  %v1813_v22 = vld [vmem:[#allocation5 + $0x4c] ss:$16 sps:$4 sm:$0xff]  }
  0x7f   : > { %523 = vmatprep.subr.bf16.mxu0 %v1793_v9  ;;  %566 = vmatprep.subr.bf16.mxu1 %v1795_v10  ;;  %v1815_v23 = vld [vmem:[#allocation5 + $0x40] ss:$16 sps:$4 sm:$0xff]   ;;  %v1816_v24 = vld [vmem:[#allocation5 + $0x48] ss:$16 sps:$4 sm:$0xff]   ;;  %v1817_v25 = vld [vmem:[#allocation5 + $0x24] ss:$16 sps:$4 sm:$0xff]  }
  0x80   : > { %v1819_v26 = vld [vmem:[#allocation5 + $0x2c] ss:$16 sps:$4 sm:$0xff]   ;;  %v1821_v27 = vld [vmem:[#allocation5 + $0x20] ss:$16 sps:$4 sm:$0xff]   ;;  %v1822_v28 = vld [vmem:[#allocation5 + $0x28] ss:$16 sps:$4 sm:$0xff]  }
  0x81   : > { %v1823_v29 = vld [vmem:[#allocation5 + $0x4] ss:$16 sps:$4 sm:$0xff]   ;;  %v1825_v30 = vld [vmem:[#allocation5 + $0xc] ss:$16 sps:$4 sm:$0xff]   ;;  %v1827_v31 = vld [vmem:[#allocation5] ss:$16 sps:$4 sm:$0xff]  }
  0x82   : > { %524 = vmatpush1.bf16.msra.mxu0 %v1797_v11  ;;  %567 = vmatpush1.bf16.msra.mxu1 %v1798_v12  ;;  %v1828_v32 = vld [vmem:[#allocation5 + $0x8] ss:$16 sps:$4 sm:$0xff]   ;;  %v302_v33 = vld [vmem:[%s2289_s27] sm:$0xff]  ;;  %v2105_v4 = vmov 0.0   ;;  %v340_v6 = vshrl.u32 %v339_v5, 7  ;;  %vm2106_vm0 = vmmov 0  }
  0x83   : > { %525 = vmatprep.subr.bf16.mxu0 %v1799_v13  ;;  %568 = vmatprep.subr.bf16.mxu1 %v1801_v14  ;;  %v1829_v35 = vld [vmem:[#allocation7 + $0x78] sm:$0xff]   ;;  %v304_v38 = vpack.c.bf16 %v303_v34, %v302_v33  ;;  %v1833_v40 = vld [vmem:[#allocation7 + $0x70] sm:$0xff]   ;;  %v1837_v44 = vld [vmem:[#allocation7 + $0x68] sm:$0xff]   ;;  %s298_s24 = scalar_lea.vmem [#allocation11], %s1445_s29  ;;  %s1549_s6 = sshll.u32 %s2161_s22, 8 }
  0x84   : > { %v1830_v36 = vld [vmem:[#allocation7 + $0xf8] sm:$0xff]   ;;  %v1834_v41 = vld [vmem:[#allocation7 + $0xf0] sm:$0xff]   ;;  %v1838_v45 = vld [vmem:[#allocation7 + $0xe8] sm:$0xff]   ;;  %v345_v7 = vsub.s32 1, %v340_v6  ;;  %v353_v8 = vsub.s32 3, %v340_v6  ;;  %v341_v9 = vsub.s32 0, %v340_v6  ;;  %s2343_s10 = scalar_lea.hbm %s2391_s5, %s1549_s6 }
  0x85   : > { %v1831_v37 = vld [vmem:[#allocation7 + $0x38] sm:$0xff]   ;;  %v1835_v42 = vld [vmem:[#allocation7 + $0x30] sm:$0xff]   ;;  %v1839_v46 = vld [vmem:[#allocation7 + $0x28] sm:$0xff]   ;;  %v349_v10 = vsub.s32 2, %v340_v6  ;;  %s1323_s26 = sshll.u32 %s298_s24, 4  ;;  %s1310_s17 = scalar_lea.sflag [#allocation4], %s2283_s14  ;;  %s2338_s26 = int_to_ptr.vmem [resolvable:$true] %s1323_s26 }
  0x86   : > { %526 = vmatpush1.bf16.msra.mxu0 %v1803_v15  ;;  %569 = vmatpush1.bf16.msra.mxu1 %v1804_v16  ;;  %v1832_v39 = vld [vmem:[#allocation7 + $0xb8] sm:$0xff]   ;;  %v1836_v43 = vld [vmem:[#allocation7 + $0xb0] sm:$0xff]   ;;  %v1840_v47 = vld [vmem:[#allocation7 + $0xa8] sm:$0xff]   ;;  %s2017_s28 = scalar_lea.vmem %s2338_s26, 256  ;;  %p2409_p7 = scmp.ne.s32.totalorder %s2401_s15, 0 }
  0x87   : > { %527 = vmatprep.subr.bf16.mxu0 %v1805_v17  ;;  %570 = vmatprep.subr.bf16.mxu1 %v1807_v18  ;;  %v1841_v48 = vld [vmem:[#allocation7 + $0x60] sm:$0xff]   ;;  %v1845_v52 = vld [vmem:[#allocation7 + $0x58] sm:$0xff]   ;;  %v1849_v56 = vld [vmem:[#allocation7 + $0x50] sm:$0xff]   ;;  %p2018_p12 = scmp.ne.s32.totalorder %s2338_s26, %s2017_s28  ;;  %s2107_s22 = smov [#allocation11]  }
  0x88   : > { %v1842_v49 = vld [vmem:[#allocation7 + $0xe0] sm:$0xff]   ;;  %v1846_v53 = vld [vmem:[#allocation7 + $0xd8] sm:$0xff]   ;;  %v1850_v57 = vld [vmem:[#allocation7 + $0xd0] sm:$0xff]   ;;  %s2021_s30 = sshll.u32 %s2107_s22, 4  ;;  %s2022_s30 = int_to_ptr.vmem [resolvable:$false] %s2021_s30 }
  0x89   : > { %v1843_v50 = vld [vmem:[#allocation7 + $0x20] sm:$0xff]   ;;  %v1847_v54 = vld [vmem:[#allocation7 + $0x18] sm:$0xff]   ;;  %v1851_v58 = vld [vmem:[#allocation7 + $0x10] sm:$0xff]   ;;  %p2019_p9 = pnand %p2018_p12, %p2409_p7  ;;  %s2023_s7 = scalar_lea.vmem %s2022_s30, 512 }
  0x8a   : > { %528 = vmatpush1.bf16.msra.mxu0 %v1809_v19  ;;  %571 = vmatpush1.bf16.msra.mxu1 %v1810_v20  ;;  %v1844_v51 = vld [vmem:[#allocation7 + $0xa0] sm:$0xff]   ;;  %v1848_v55 = vld [vmem:[#allocation7 + $0x98] sm:$0xff]   ;;  %v1852_v59 = vld [vmem:[#allocation7 + $0x90] sm:$0xff]   ;;  %p2024_p5 = scmp.lt.s32.totalorder %s2338_s26, %s2022_s30  ;;  %p2025_p10 = scmp.lt.s32.totalorder %s2023_s7, %s2017_s28 }
  0x8b   : > { %529 = vmatprep.subr.bf16.mxu0 %v1811_v21  ;;  %572 = vmatprep.subr.bf16.mxu1 %v1813_v22  ;;  %v1853_v60 = vld [vmem:[#allocation7 + $0x48] sm:$0xff]   ;;  %v1857_v0 = vld [vmem:[#allocation7 + $0x40] sm:$0xff]   ;;  %p2020_p13 = pneg %p2019_p9 }
  0x8c   : > { %v1854_v61 = vld [vmem:[#allocation7 + $0xc8] sm:$0xff]   ;;  %v1858_v1 = vld [vmem:[#allocation7 + $0xc0] sm:$0xff]   ;;  %p2026_p1 = por %p2025_p10, %p2024_p5 }
  0x8d   : > { %v1855_v62 = vld [vmem:[#allocation7 + $0x8] sm:$0xff]   ;;  %v1859_v2 = vld [vmem:[#allocation7] sm:$0xff]  }
  0x8e   : > { %530 = vmatpush1.bf16.msra.mxu0 %v1815_v23  ;;  %573 = vmatpush1.bf16.msra.mxu1 %v1816_v24  ;;  %v1856_v63 = vld [vmem:[#allocation7 + $0x88] sm:$0xff]   ;;  %v1860_v3 = vld [vmem:[#allocation7 + $0x80] sm:$0xff]   ;;  %p2027_p2 = pnand %p2026_p1, %p2020_p13 }
  0x8f   : > { %531 = vmatprep.subr.bf16.mxu0 %v1817_v25  ;;  %574 = vmatprep.subr.bf16.mxu1 %v1819_v26  ;;  %v337_v11 = vld [vmem:[#allocation10] sm:$0xf] }
  0x90   : > { %v346_v14 = vrot.slane %v337_v11, %v345_v7  ;;  %v354_v15 = vrot.slane %v337_v11, %v353_v8  ;;  %v342_v16 = vrot.slane %v337_v11, %v341_v9  ;;  %v350_v17 = vrot.slane %v337_v11, %v349_v10 }
  0x92   : > { %532 = vmatpush1.bf16.msra.mxu0 %v1821_v27  ;;  %575 = vmatpush1.bf16.msra.mxu1 %v1822_v28 }
  0x93   : > { %533 = vmatprep.subr.bf16.mxu0 %v1823_v29  ;;  %576 = vmatprep.subr.bf16.mxu1 %v1825_v30 }
  0x96   : > { %534 = vmatpush1.bf16.msra.mxu0 %v1827_v31  ;;  %577 = vmatpush1.bf16.msra.mxu1 %v1828_v32 }
  0x97   : > { %1550 = vmatprep.subr.bf16.mxu0 %v1829_v35  ;;  %1572 = vmatprep.subr.bf16.mxu1 %v1830_v36 }
  0x99   : > { %552 = vmatmul.mubr.bf16.vlgmr.msra.gmra.mxu0 %v304_v38  ;;  %595 = vmatmul.mubr.bf16.vlgmr.msra.gmra.mxu1 %v304_v38 }
  0x9a   : > { %1551 = vmatpush3.bf16.msra.mxu0 %v1831_v37  ;;  %1573 = vmatpush3.bf16.msra.mxu1 %v1832_v39 }
  0x9b   : > { %1552 = vmatprep.subr.bf16.mxu0 %v1833_v40  ;;  %1574 = vmatprep.subr.bf16.mxu1 %v1834_v41 }
  0x9e   : > { %1553 = vmatpush3.bf16.msra.mxu0 %v1835_v42  ;;  %1575 = vmatpush3.bf16.msra.mxu1 %v1836_v43  ;;  %v1861_v42 = vld [vmem:[#allocation8 + $0xa8] ss:$12 sps:$4 sm:$0xff]  }
  0x9f   : > { %1554 = vmatprep.subr.bf16.mxu0 %v1837_v44  ;;  %1576 = vmatprep.subr.bf16.mxu1 %v1838_v45  ;;  %v1862_v45 = vld [vmem:[#allocation8 + $0x90] ss:$12 sps:$4 sm:$0xff]  }
  0xa2   : > { %1555 = vmatpush3.bf16.msra.mxu0 %v1839_v46  ;;  %1577 = vmatpush3.bf16.msra.mxu1 %v1840_v47  ;;  %v1863_v46 = vld [vmem:[#allocation8 + $0x78] ss:$12 sps:$4 sm:$0xff]   ;;  %v1864_v47 = vld [vmem:[#allocation8 + $0x60] ss:$12 sps:$4 sm:$0xff]  }
  0xa3   : > { %1556 = vmatprep.subr.bf16.mxu0 %v1841_v48  ;;  %1578 = vmatprep.subr.bf16.mxu1 %v1842_v49  ;;  %v1865_v48 = vld [vmem:[#allocation8 + $0x48] ss:$12 sps:$4 sm:$0xff]   ;;  %v1866_v49 = vld [vmem:[#allocation8 + $0x30] ss:$12 sps:$4 sm:$0xff]  }
  0xa6   : > { %1557 = vmatpush3.bf16.msra.mxu0 %v1843_v50  ;;  %1579 = vmatpush3.bf16.msra.mxu1 %v1844_v51  ;;  %v1867_v50 = vld [vmem:[#allocation8 + $0x18] ss:$12 sps:$4 sm:$0xff]   ;;  %v1868_v51 = vld [vmem:[#allocation8] ss:$12 sps:$4 sm:$0xff]  }
  0xa7   : > { %1558 = vmatprep.subr.bf16.mxu0 %v1845_v52  ;;  %1580 = vmatprep.subr.bf16.mxu1 %v1846_v53  ;;  %v1869_v52 = vld [vmem:[#allocation8 + $0xac] ss:$12 sps:$4 sm:$0xff]   ;;  %v1870_v53 = vld [vmem:[#allocation8 + $0x94] ss:$12 sps:$4 sm:$0xff]  }
  0xaa   : > { %1559 = vmatpush3.bf16.msra.mxu0 %v1847_v54  ;;  %1581 = vmatpush3.bf16.msra.mxu1 %v1848_v55  ;;  %v1871_v54 = vld [vmem:[#allocation8 + $0x7c] ss:$12 sps:$4 sm:$0xff]   ;;  %v1872_v55 = vld [vmem:[#allocation8 + $0x64] ss:$12 sps:$4 sm:$0xff]  }
  0xab   : > { %1560 = vmatprep.subr.bf16.mxu0 %v1849_v56  ;;  %1582 = vmatprep.subr.bf16.mxu1 %v1850_v57  ;;  %v1873_v56 = vld [vmem:[#allocation8 + $0x4c] ss:$12 sps:$4 sm:$0xff]  }
  0xae   : > { %1561 = vmatpush3.bf16.msra.mxu0 %v1851_v58  ;;  %1583 = vmatpush3.bf16.msra.mxu1 %v1852_v59  ;;  %v1483_v59 = vld [vmem:[#allocation10 + $0x4] ss:$0 sm:$0xff] }
  0xaf   : > { %1562 = vmatprep.subr.bf16.mxu0 %v1853_v60  ;;  %1584 = vmatprep.subr.bf16.mxu1 %v1854_v61 }
  0xb2   : > { %1563 = vmatpush3.bf16.msra.mxu0 %v1855_v62  ;;  %1585 = vmatpush3.bf16.msra.mxu1 %v1856_v63 }
  0xb3   : > { %1564 = vmatprep.subr.bf16.mxu0 %v1857_v0  ;;  %1586 = vmatprep.subr.bf16.mxu1 %v1858_v1 }
  0xb6   : > { %1565 = vmatpush3.bf16.msra.mxu0 %v1859_v2  ;;  %1587 = vmatpush3.bf16.msra.mxu1 %v1860_v3 }
  0xb7   : > { %1621 = vmatprep.subr.bf16.mxu0 %v2105_v4  ;;  %1641 = vmatprep.subr.bf16.mxu1 %v2105_v4 }
 0x159   : > { %v553_v12 = vpop.f32.mrf.mxu0  ;;  %v596_v13 = vpop.f32.mrf.mxu1 }
 0x15a   : > { %v554_v26 = vadd.f32 %v553_v12, %v342_v16  ;;  %v597_v27 = vadd.f32 %v596_v13, %v350_v17 }
 0x15b   : > { %v555_v18 = vpop.f32.mrf.mxu0  ;;  %v598_v19 = vpop.f32.mrf.mxu1 }
 0x15c   : > { %v556_v22 = vadd.f32 %v555_v18, %v346_v14  ;;  %v599_v23 = vadd.f32 %v598_v19, %v354_v15  ;;  %v605_v38 = vmax.f32 %v554_v26, 0.0  ;;  %v607_v39 = vmax.f32 %v597_v27, 0.0  ;;  %v1878_v18 = vld [vmem:[#allocation8 + $0x98] ss:$12 sps:$4 sm:$0xff]   ;;  %v1879_v19 = vld [vmem:[#allocation8 + $0x80] ss:$12 sps:$4 sm:$0xff]  }
 0x15d   : > { %v557_v20 = vpop.f32.mrf.mxu0  ;;  %v600_v21 = vpop.f32.mrf.mxu1 }
 0x15e   : > { %v558_v24 = vadd.f32 %v557_v20, %v342_v16  ;;  %v601_v25 = vadd.f32 %v600_v21, %v350_v17  ;;  %v606_v34 = vmax.f32 %v556_v22, 0.0  ;;  %v608_v35 = vmax.f32 %v599_v23, 0.0  ;;  %v1876_v16 = vld [vmem:[#allocation8 + $0x4] ss:$12 sps:$4 sm:$0xff]   ;;  %v1880_v20 = vld [vmem:[#allocation8 + $0x68] ss:$12 sps:$4 sm:$0xff]  }
 0x15f   : > { %v559_v28 = vpop.f32.mrf.mxu0  ;;  %v602_v29 = vpop.f32.mrf.mxu1  ;;  %v1877_v17 = vld [vmem:[#allocation8 + $0xb0] ss:$12 sps:$4 sm:$0xff]   ;;  %v1516_v22 = vld [vmem:[#allocation10 + $0x5] ss:$0 sm:$0xff] }
 0x160   : > { %v560_v30 = vadd.f32 %v559_v28, %v346_v14  ;;  %v603_v31 = vadd.f32 %v602_v29, %v354_v15  ;;  %v609_v32 = vmax.f32 %v558_v24, 0.0  ;;  %v611_v33 = vmax.f32 %v601_v25, 0.0  ;;  %v1874_v14 = vld [vmem:[#allocation8 + $0x34] ss:$12 sps:$4 sm:$0xff]   ;;  %v1875_v15 = vld [vmem:[#allocation8 + $0x1c] ss:$12 sps:$4 sm:$0xff]  }
 0x161   : > { %v1881_v21 = vld [vmem:[#allocation8 + $0x50] ss:$12 sps:$4 sm:$0xff]  }
 0x162   : > { %v610_v36 = vmax.f32 %v560_v30, 0.0  ;;  %v612_v37 = vmax.f32 %v603_v31, 0.0  ;;  %v613_v43 = vpack.c.bf16 %v609_v32, %v605_v38  ;;  %v615_v44 = vpack.c.bf16 %v611_v33, %v607_v39  ;;  %v1882_v32 = vld [vmem:[#allocation8 + $0x38] ss:$12 sps:$4 sm:$0xff]   ;;  %v1883_v33 = vld [vmem:[#allocation8 + $0x20] ss:$12 sps:$4 sm:$0xff]  }
 0x164   : > { %v614_v40 = vpack.c.bf16 %v610_v36, %v606_v34  ;;  %v616_v41 = vpack.c.bf16 %v612_v37, %v608_v35  ;;  %v1884_v34 = vld [vmem:[#allocation8 + $0x8] ss:$12 sps:$4 sm:$0xff]   ;;  %v1525_v35 = vld [vmem:[#allocation10 + $0x6] ss:$0 sm:$0xff] }
 0x166   : > { %912 = vmatprep.mubr.bf16.mxu0 %v614_v40  ;;  %953 = vmatprep.mubr.bf16.mxu1 %v616_v41 }
 0x167   : > { %913 = vmatmul.mubr.bf16.vlgmr.msra.gmra.mxu0 %v613_v43  ;;  %954 = vmatmul.mubr.bf16.vlgmr.msra.gmra.mxu1 %v615_v44 }
 0x168   : > { %1622 = vmatpush3.bf16.msra.mxu0 %v1861_v42  ;;  %1637 = vmatprep.mubr.msk.bf16.mxu0 %vm2106_vm0, %v2105_v4 }
 0x169   : > { %1623 = vmatprep.subr.bf16.mxu0 %v2105_v4  ;;  %1657 = vmatprep.mubr.msk.bf16.mxu1 %vm2106_vm0, %v2105_v4 }
 0x16a   : > { %1642 = vmatpush3.bf16.msra.mxu1 %v1869_v52 }
 0x16b   : > { %1643 = vmatprep.subr.bf16.mxu1 %v2105_v4 }
 0x16c   : > { %1624 = vmatpush3.bf16.msra.mxu0 %v1862_v45  ;;  %v1534_v45 = vld [vmem:[#allocation10 + $0x7] ss:$0 sm:$0xff] }
 0x16d   : > { %1625 = vmatprep.subr.bf16.mxu0 %v2105_v4 }
 0x16e   : > { %1644 = vmatpush3.bf16.msra.mxu1 %v1870_v53 }
 0x16f   : > { %1645 = vmatprep.subr.bf16.mxu1 %v2105_v4 }
 0x170   : > { %1626 = vmatpush3.bf16.msra.mxu0 %v1863_v46 }
 0x171   : > { %1627 = vmatprep.subr.bf16.mxu0 %v2105_v4 }
 0x172   : > { %1646 = vmatpush3.bf16.msra.mxu1 %v1871_v54 }
 0x173   : > { %1647 = vmatprep.subr.bf16.mxu1 %v2105_v4 }
 0x174   : > { %1628 = vmatpush3.bf16.msra.mxu0 %v1864_v47 }
 0x175   : > { %1629 = vmatprep.subr.bf16.mxu0 %v2105_v4 }
 0x176   : > { %1648 = vmatpush3.bf16.msra.mxu1 %v1872_v55 }
 0x177   : > { %1649 = vmatprep.subr.bf16.mxu1 %v2105_v4 }
 0x178   : > { %1630 = vmatpush3.bf16.msra.mxu0 %v1865_v48 }
 0x179   : > { %1631 = vmatprep.subr.bf16.mxu0 %v2105_v4 }
 0x17a   : > { %1650 = vmatpush3.bf16.msra.mxu1 %v1873_v56 }
 0x17b   : > { %1651 = vmatprep.subr.bf16.mxu1 %v2105_v4 }
 0x17c   : > { %1632 = vmatpush3.bf16.msra.mxu0 %v1866_v49 }
 0x17d   : > { %1633 = vmatprep.subr.bf16.mxu0 %v2105_v4 }
 0x17e   : > { %1652 = vmatpush3.bf16.msra.mxu1 %v1874_v14 }
 0x17f   : > { %1653 = vmatprep.subr.bf16.mxu1 %v2105_v4 }
 0x180   : > { %1634 = vmatpush3.bf16.msra.mxu0 %v1867_v50 }
 0x181   : > { %1635 = vmatprep.subr.bf16.mxu0 %v2105_v4 }
 0x182   : > { %1654 = vmatpush3.bf16.msra.mxu1 %v1875_v15 }
 0x183   : > { %1655 = vmatprep.subr.bf16.mxu1 %v2105_v4 }
 0x184   : > { %1636 = vmatpush3.bf16.msra.mxu0 %v1868_v51 }
 0x185   : > { %1661 = vmatprep.subr.bf16.mxu0 %v2105_v4 }
 0x186   : > { %1656 = vmatpush3.bf16.msra.mxu1 %v1876_v16 }
 0x227   : > { %v1566_v57 = vpop.f32.mrf.mxu0  ;;  %v1588_v58 = vpop.f32.mrf.mxu1 }
 0x229   : > { %v1567_v60 = vpop.f32.mrf.mxu0  ;;  %v1589_v61 = vpop.f32.mrf.mxu1 }
 0x22a   : > { %v1568_v62 = vadd.f32 %v1567_v60, %v1566_v57  ;;  %v1590_v5 = vadd.f32 %v1589_v61, %v1588_v58 }
 0x22b   : > { %v1569_v63 = vpop.f32.mrf.mxu0  ;;  %v1591_v0 = vpop.f32.mrf.mxu1 }
 0x22c   : > { %v915_v1 = vadd.f32 %v1568_v62, %v1483_v59 }
 0x22d   : > { %v1570_v2 = vpop.f32.mrf.mxu0  ;;  %v1592_v3 = vpop.f32.mrf.mxu1 }
 0x22e   : > { %v1571_v6 = vadd.f32 %v1570_v2, %v1569_v63  ;;  %v956_v7 = vadd.f32 %v1590_v5, %v915_v1  ;;  %v1593_v9 = vadd.f32 %v1592_v3, %v1591_v0 }
 0x230   : > { %v918_v8 = vadd.f32 %v1571_v6, %v1483_v59  ;;  %v962_v11 = vmax.f32 %v956_v7, 0.0 }
 0x232   : > { %v959_v10 = vadd.f32 %v1593_v9, %v918_v8 }
 0x234   : > { %v963_v12 = vmax.f32 %v959_v10, 0.0 }
 0x236   : > { %v964_v13 = vpack.c.bf16 %v963_v12, %v962_v11 }
 0x238   : > { %1638 = vmatmul.mubr.bf16.vlgmr.msra.gmra.mxu0 %v964_v13 }
 0x239   : > { %1677 = vmatprep.mubr.msk.bf16.mxu0 %vm2106_vm0, %v2105_v4  ;;  %1662 = vmatpush3.bf16.msra.mxu0 %v1877_v17 }
 0x23a   : > { %1663 = vmatprep.subr.bf16.mxu0 %v2105_v4 }
 0x23d   : > { %1664 = vmatpush3.bf16.msra.mxu0 %v1878_v18 }
 0x23e   : > { %1665 = vmatprep.subr.bf16.mxu0 %v2105_v4 }
 0x241   : > { %1666 = vmatpush3.bf16.msra.mxu0 %v1879_v19 }
 0x242   : > { %1667 = vmatprep.subr.bf16.mxu0 %v2105_v4 }
 0x245   : > { %1668 = vmatpush3.bf16.msra.mxu0 %v1880_v20 }
 0x246   : > { %1669 = vmatprep.subr.bf16.mxu0 %v2105_v4 }
 0x249   : > { %1670 = vmatpush3.bf16.msra.mxu0 %v1881_v21 }
 0x24a   : > { %1671 = vmatprep.subr.bf16.mxu0 %v2105_v4 }
 0x24d   : > { %1672 = vmatpush3.bf16.msra.mxu0 %v1882_v32 }
 0x24e   : > { %1673 = vmatprep.subr.bf16.mxu0 %v2105_v4 }
 0x251   : > { %1674 = vmatpush3.bf16.msra.mxu0 %v1883_v33 }
 0x252   : > { %1675 = vmatprep.subr.bf16.mxu0 %v2105_v4 }
 0x255   : > { %1676 = vmatpush3.bf16.msra.mxu0 %v1884_v34 }
 0x2f8   : > { %v1070_v23 = vpop.f32.mrf.mxu0 }
 0x2f9   : > { %v1071_v25 = vadd.f32 %v1516_v22, %v1070_v23 }
 0x2fa   : > { %v1639_v24 = vpop.f32.mrf.mxu0 }
 0x2fb   : > { %v1077_v29 = vmax.f32 %v1071_v25, 0.0 }
 0x2fc   : > { %v1073_v26 = vpop.f32.mrf.mxu0 }
 0x2fd   : > { %v1074_v27 = vadd.f32 %v1516_v22, %v1073_v26 }
 0x2fe   : > { %v1640_v28 = vpop.f32.mrf.mxu0 }
 0x2ff   : > { %v1078_v30 = vmax.f32 %v1074_v27, 0.0 }
 0x301   : > { %v1079_v31 = vpack.c.bf16 %v1078_v30, %v1077_v29 }
 0x303   : > { %1658 = vmatmul.mubr.bf16.vlgmr.msra.gmra.mxu1 %v1079_v31 }
 0x3c3   : > { %v1185_v36 = vpop.f32.mrf.mxu1 }
 0x3c4   : > { %v1186_v38 = vadd.f32 %v1525_v35, %v1185_v36 }
 0x3c5   : > { %v1659_v37 = vpop.f32.mrf.mxu1 }
 0x3c6   : > { %v1192_v42 = vmax.f32 %v1186_v38, 0.0 }
 0x3c7   : > { %v1188_v39 = vpop.f32.mrf.mxu1 }
 0x3c8   : > { %v1189_v40 = vadd.f32 %v1525_v35, %v1188_v39 }
 0x3c9   : > { %v1660_v41 = vpop.f32.mrf.mxu1 }
 0x3ca   : > { %v1193_v43 = vmax.f32 %v1189_v40, 0.0 }
 0x3cc   : > { %v1194_v44 = vpack.c.bf16 %v1193_v43, %v1192_v42 }
 0x3ce   : > { %1678 = vmatmul.mubr.bf16.vlgmr.msra.gmra.mxu0 %v1194_v44 }
 0x48e   : > { %v1300_v46 = vpop.f32.mrf.mxu0 }
 0x48f   : > { %v1301_v4 = vadd.f32 %v1534_v45, %v1300_v46 }
 0x490   : > { %v1679_v47 = vpop.f32.mrf.mxu0 }
 0x491   : > { %1307 = vst [vmem:[%s298_s24] sm:$0xff] %v1301_v4 }
 0x492   : > { %v1303_v48 = vpop.f32.mrf.mxu0 }
 0x493   : > { %v1304_v49 = vadd.f32 %v1534_v45, %v1303_v48 }
 0x494   : > { %v1680_v50 = vpop.f32.mrf.mxu0 }
 0x495   : > { %1308 = vst [vmem:[%s298_s24 + $0x8] sm:$0xff] %v1304_v49 }
 0x496   : > { %2030 = shalt.err (!%p2027_p2)
}
 0x497   : > { %s2031_s11 = scalar_lea.hbm %s2343_s10, 256  ;;  %s2035_s23 = scalar_lea.hbm %s2391_s5, 512 }
 0x498   : > { %p2032_p3 = scmp.ne.s32.totalorder %s2343_s10, %s2031_s11  ;;  %p2036_p0 = scmp.lt.s32.totalorder %s2343_s10, %s2391_s5 }
 0x499   : > { %p2037_p11 = scmp.lt.s32.totalorder %s2035_s23, %s2031_s11 }
 0x49a   : > { %p2033_p4 = pnand %p2032_p3, %p2409_p7 }
 0x49b   : > { %p2038_p6 = por %p2037_p11, %p2036_p0 }
 0x49c   : > { %p2034_p8 = pneg %p2033_p4 }
 0x49e   : > { %p2039_p12 = pnand %p2038_p6, %p2034_p8 }
 0x4a0   : > { %2042 = shalt.err (!%p2039_p12)
}
 0x4a1   : > { %s2108_s6 = smov 128   ;;  %s2109_s8 = smov 8  }
 0x4a2   : > { %1699 = dma.vmem_to_hbm [thread:$0]  (%p2409_p7), %s2338_s26, 256, %s2343_s10, %s1310_s17, %s2108_s6, %s2108_s6, %s2109_s8  }
 0x4a3 PF: > { %s1338_s9 = sand.u32 1, %s2077_s18   ;;  %p2410_p9 = scmp.ne.s32.totalorder %s2397_s25, 0 }
 0x4a4   : > { %p2411_p13 = scmp.ge.s32.totalorder %s2089_s21, 2  ;;  %s1339_s28 = scalar_lea.sflag [#allocation4], %s1338_s9 }
 0x4a6   : > { %p1719_p5 = pnand %p2411_p13, %p2410_p9 }
 0x4a8   : > { %p1720_p10 = pneg %p1719_p5 }
 0x4aa   : > { %2072 = dma.done.wait (%p1720_p10), %s1339_s28, 256  }
 0x4ab   : > { %2074 = vsyncadd (%p1720_p10), %s1339_s28, 4294967040  ;;  %p20_p1 = scmp.ge.s32.totalorder %s2228_s13, 4   ;;  %s2412_s18 = smov %s2081_s19 }
 0x4ac   : > { %s2413_s19 = smov %s2085_s20  ;;  %s2414_s20 = smov %s2244_s16 }
 0x4ad   : > { %s2415_s21 = smov %s2228_s13  ;;  %22 = sbr.rel (!%p20_p1) target bundleno = 7 (0x7), region = 101 }
 0x4b2   :  { %1344 = vsyncpa [#allocation3], 1 }
 0x4b3   :  { %1346 = vsyncpa [#allocation3 + $0x1], 1 }
 0x4b4   :  { %1347 = vsyncpa [#allocation6], 1 }
 0x4b5   :  { %1348 = vsyncpa [#allocation9], 1 }
 0x4b6   :  { %1349 = vsyncpa [#allocation4], 1 }
 0x4b7   :  { %1351 = vsyncpa [#allocation4 + $0x1], 1 }

</bundles_post_ra>
